<compile_context>
chip_gen: v6e
topology: v6e:2x2x1
jax: 0.10.0
libtpu: 0.0.40
codegen_flags: <defaults>
</compile_context>

<pallas_src>
import math
import functools

import jax
import jax.numpy as jnp
from jax import lax
from jax.experimental import pallas as pl
from jax.experimental.pallas import tpu as pltpu


_LN3 = math.log(3.0)
_INV_SQRT_2PI = 1.0 / math.sqrt(2.0 * math.pi)


# --------------------------- VMEM budgeting helpers ---------------------------
@functools.lru_cache(maxsize=1)
def _vmem_budget():
    """Per-kernel VMEM budget (bytes) derived from physical VMEM.

    ~0.75 of physical with >=16 MiB headroom:
      v5e/v6e (128 MiB) -> 96 MiB, v7x (64 MiB) -> 48 MiB.
    """
    try:
        cap = int(getattr(pltpu.get_tpu_info(), "vmem_capacity_bytes",
                          128 * 1024 * 1024))
    except Exception:
        cap = 64 * 1024 * 1024          # conservative default fits every gen
    return int(min(cap - (16 << 20), cap * 3 // 4))


def _pick_tile(n, cap, fits=None, min_grid=1):
    """Largest tile t dividing n with t <= cap, fits(t), and n//t >= min_grid.

    Prefers MXU-friendly multiples of 256, then 128, then 16, then 8.
    """
    if fits is None:
        fits = lambda t: True

    def ok(t):
        return t >= 1 and n % t == 0 and fits(t) and (n // t) >= min_grid

    if n <= cap and ok(n):
        return n
    hi = min(cap, n)
    for step in (256, 128, 16, 8):
        t = (hi // step) * step
        while t >= step:
            if ok(t):
                return t
            t -= step
    if min_grid > 1:                       # relax the multi-step preference
        return _pick_tile(n, cap, fits=fits, min_grid=1)
    # TODO(synk): pad-to-multiple + cdiv grid instead of full-extent fallback.
    return n


# ----------------------- fused multi-output projection ------------------------
def _fused_proj_kernel(x_ref, w_ref, b_ref, *out_refs, widths, sigma_idx):
    """y = x @ [w0|w1|...] + b, split into per-output slices.

    The slice at `sigma_idx` gets the Anomaly-Transformer sigma transform
    (sigmoid(5x)+1e-5, 3^x-1) fused as an epilogue.
    """
    x = x_ref[...].astype(jnp.bfloat16)              # bf16 MXU operand
    y = jnp.dot(x, w_ref[...], preferred_element_type=jnp.float32) + b_ref[...]
    off = 0
    for i, (ref, n) in enumerate(zip(out_refs, widths)):
        part = y[:, off:off + n]
        if i == sigma_idx:
            s = jax.nn.sigmoid(part * 5.0) + 1e-5
            part = jnp.exp(s * _LN3) - 1.0           # 3**s - 1
        ref[...] = part.astype(ref.dtype)
        off += n


def fused_projection(x, weights, biases, out_dtypes, sigma_idx=-1):
    """x:(M,K); weights[i]:(K,Ni); returns a tuple of (M,Ni) arrays."""
    M, K = x.shape
    widths = tuple(int(w.shape[1]) for w in weights)
    ntot = sum(widths)
    w_cat = jnp.concatenate(weights, axis=1).astype(jnp.bfloat16)
    b_cat = jnp.concatenate(biases, axis=0).reshape(1, ntot).astype(jnp.float32)

    budget = _vmem_budget()
    out_bytes = [jnp.dtype(d).itemsize for d in out_dtypes]

    def footprint(tm):
        ins = 2 * (tm * K * x.dtype.itemsize + K * ntot * 2 + ntot * 4)
        outs = 2 * sum(tm * n * b for n, b in zip(widths, out_bytes))
        work = tm * ntot * 4                 # f32 GEMM result held as a value
        return ins + outs + work

    # min_grid=2 keeps both v7x TensorCores busy whenever M allows it.
    tm = _pick_tile(M, 1024, fits=lambda t: footprint(t) <= budget, min_grid=2)

    kern = functools.partial(_fused_proj_kernel, widths=widths,
                             sigma_idx=sigma_idx)
    return pl.pallas_call(
        kern,
        grid=(M // tm,),
        out_shape=tuple(jax.ShapeDtypeStruct((M, n), d)
                        for n, d in zip(widths, out_dtypes)),
        in_specs=[
            pl.BlockSpec((tm, K), lambda i: (i, 0)),
            pl.BlockSpec((K, ntot), lambda i: (0, 0)),
            pl.BlockSpec((1, ntot), lambda i: (0, 0)),
        ],
        out_specs=tuple(pl.BlockSpec((tm, n), lambda i: (i, 0)) for n in widths),
        compiler_params=pltpu.CompilerParams(
            dimension_semantics=("parallel",),
            vmem_limit_bytes=budget),
    )(x, w_cat, b_cat)


# ---------------- anomaly attention + fused output projection ----------------
def _attn_kernel(q_ref, k_ref, v_ref, sig_ref, wo_ref, bo_ref,
                 out_ref, series_ref, prior_ref, sigma_ref, acc_ref,
                 *, n_heads, scale):
    H = n_heads
    tL = q_ref.shape[1]
    S = k_ref.shape[1]
    E = q_ref.shape[2] // H
    D = v_ref.shape[2] // H

    # scale folded into q at (tL, H*E) granularity; bf16 operands for the MXU,
    # element-wise math stays f32 (v5e has no bf16 VPU/EUP datapath).
    q = (q_ref[0].astype(jnp.float32) * scale).astype(jnp.bfloat16)   # (tL,H*E)
    k = k_ref[0].astype(jnp.bfloat16)                                  # (S, H*E)
    v = v_ref[0].astype(jnp.bfloat16)                                  # (S, H*D)
    sig = sig_ref[0].astype(jnp.float32)                               # (tL, H)

    # -0.5*|i-j|^2 for this query tile, built in-kernel (no (L,S) HBM input)
    row0 = (pl.program_id(1) * tL).astype(jnp.float32)
    ii = lax.broadcasted_iota(jnp.float32, (tL, S), 0) + row0
    jj = lax.broadcasted_iota(jnp.float32, (tL, S), 1)
    diff = ii - jj
    neg_half_d2 = -0.5 * (diff * diff)

    dim_nums = (((1,), (1,)), ((), ()))          # contract last dims: A @ B^T

    for h in range(H):
        qh = q[:, h * E:(h + 1) * E]             # (tL, E) bf16
        kh = k[:, h * E:(h + 1) * E]             # (S,  E) bf16
        vh = v[:, h * D:(h + 1) * D]             # (S,  D) bf16

        scores = lax.dot_general(qh, kh, dim_nums,
                                 preferred_element_type=jnp.float32)  # (tL, S)
        m = jnp.max(scores, axis=-1, keepdims=True)
        e = jnp.exp(scores - m)
        inv_denom = pl.reciprocal(jnp.sum(e, axis=-1, keepdims=True),
                                  approx=True)
        series_h = e * inv_denom                 # (tL, S) f32

        # gaussian prior: sigma math at (tL,1) granularity, one (tL,S) exp
        sh = sig[:, h:h + 1]                     # (tL, 1)
        inv_s = pl.reciprocal(sh, approx=True)
        prior_h = (_INV_SQRT_2PI * inv_s) * jnp.exp(neg_half_d2 * (inv_s * inv_s))

        # attended values land in a VMEM scratch slab (no head_outs list /
        # concatenate -> no vreg spills, no lane-relayout copies)
        acc_ref[:, h * D:(h + 1) * D] = jnp.dot(
            series_h.astype(jnp.bfloat16), vh,
            preferred_element_type=jnp.float32)

        # interleave the big (tL,S) stores with per-head compute
        series_ref[0, h] = series_h.astype(series_ref.dtype)
        prior_ref[0, h] = prior_h.astype(prior_ref.dtype)
        sigma_ref[0, h] = jnp.broadcast_to(sh, (tL, S)).astype(sigma_ref.dtype)

    # fused output projection from the lane-dense (tL, H*D) scratch
    y = jnp.dot(acc_ref[...].astype(jnp.bfloat16), wo_ref[...],
                preferred_element_type=jnp.float32) + bo_ref[...]
    out_ref[0] = y.astype(out_ref.dtype)


def anomaly_attention(q, k, v, sig, wo, bo, *, n_heads, scale,
                      assoc_dtype=jnp.bfloat16):
    """q:(B,L,H*E) k:(B,S,H*E) v:(B,S,H*D) sig:(B,L,H) wo:(H*D,dm) bo:(dm,)."""
    B, L, HE = q.shape
    S = k.shape[1]
    HD = v.shape[2]
    d_model = wo.shape[1]
    H = n_heads

    budget = _vmem_budget()
    assoc_bytes = jnp.dtype(assoc_dtype).itemsize

    def footprint(tL):
        ins = 2 * (tL * HE * q.dtype.itemsize + S * HE * k.dtype.itemsize
                   + S * HD * v.dtype.itemsize + tL * H * 4
                   + HD * d_model * 2 + d_model * 4)
        outs = 2 * (tL * d_model * q.dtype.itemsize
                    + 3 * H * tL * S * assoc_bytes)     # series/prior/sigma
        scratch = tL * HD * 4
        work = 4 * tL * S * 4                           # per-head f32 temporaries
        return ins + outs + scratch + work

    tL = _pick_tile(L, 512, fits=lambda t: footprint(t) <= budget)

    kern = functools.partial(_attn_kernel, n_heads=H, scale=scale)
    return pl.pallas_call(
        kern,
        grid=(B, L // tL),
        out_shape=(
            jax.ShapeDtypeStruct((B, L, d_model), q.dtype),
            jax.ShapeDtypeStruct((B, H, L, S), assoc_dtype),
            jax.ShapeDtypeStruct((B, H, L, S), assoc_dtype),
            jax.ShapeDtypeStruct((B, H, L, S), assoc_dtype),
        ),
        in_specs=[
            pl.BlockSpec((1, tL, HE), lambda b, l: (b, l, 0)),
            pl.BlockSpec((1, S, HE), lambda b, l: (b, 0, 0)),
            pl.BlockSpec((1, S, HD), lambda b, l: (b, 0, 0)),
            pl.BlockSpec((1, tL, H), lambda b, l: (b, l, 0)),
            pl.BlockSpec((HD, d_model), lambda b, l: (0, 0)),
            pl.BlockSpec((1, d_model), lambda b, l: (0, 0)),
        ],
        out_specs=(
            pl.BlockSpec((1, tL, d_model), lambda b, l: (b, l, 0)),
            pl.BlockSpec((1, H, tL, S), lambda b, l: (b, 0, l, 0)),
            pl.BlockSpec((1, H, tL, S), lambda b, l: (b, 0, l, 0)),
            pl.BlockSpec((1, H, tL, S), lambda b, l: (b, 0, l, 0)),
        ),
        scratch_shapes=[pltpu.VMEM((tL, HD), jnp.float32)],
        compiler_params=pltpu.CompilerParams(
            dimension_semantics=("parallel", "parallel"),
            vmem_limit_bytes=budget),
    )(q, k, v, sig, wo.astype(jnp.bfloat16), bo.reshape(1, d_model))


# ---------------------------- AttentionLayer forward -------------------------
def attention_layer_forward(params, queries, keys, values, attn_mask=None,
                            n_heads=4, assoc_dtype=jnp.bfloat16):
    # TODO(synk): TriangularCausalMask (mask_flag=True) path not implemented;
    #             attn_mask accepted but ignored (encoder configuration).
    B, L, d_model = queries.shape
    S = keys.shape[1]
    H = n_heads
    HE = params["wq"].shape[1]
    HD = params["wv"].shape[1]
    E = HE // H
    f32, bf16 = jnp.float32, jnp.bfloat16

    xq = queries.reshape(B * L, d_model)
    if (queries is keys) and (keys is values):
        # encoder self-attention fast path: ONE activation read for q/k/v/sigma
        q2, k2, v2, sig2 = fused_projection(
            xq,
            weights=[params["wq"], params["wk"], params["wv"], params["ws"]],
            biases=[params["bq"], params["bk"], params["bv"], params["bs"]],
            out_dtypes=[queries.dtype, bf16, bf16, f32],
            sigma_idx=3)
    else:
        q2, sig2 = fused_projection(
            xq, weights=[params["wq"], params["ws"]],
            biases=[params["bq"], params["bs"]],
            out_dtypes=[queries.dtype, f32], sigma_idx=1)
        if keys is values:
            k2, v2 = fused_projection(
                keys.reshape(B * S, d_model),
                weights=[params["wk"], params["wv"]],
                biases=[params["bk"], params["bv"]],
                out_dtypes=[bf16, bf16])
        else:
            (k2,) = fused_projection(keys.reshape(B * S, d_model),
                                     weights=[params["wk"]],
                                     biases=[params["bk"]],
                                     out_dtypes=[bf16])
            (v2,) = fused_projection(values.reshape(B * S, d_model),
                                     weights=[params["wv"]],
                                     biases=[params["bv"]],
                                     out_dtypes=[bf16])

    q3 = q2.reshape(B, L, HE)        # native (B, L, H*E) layout; no transposes
    k3 = k2.reshape(B, S, HE)
    v3 = v2.reshape(B, S, HD)
    sig3 = sig2.reshape(B, L, H)     # already sigma-transformed in-kernel

    scale = 1.0 / math.sqrt(E)
    out_final, series, prior, sigma_out = anomaly_attention(
        q3, k3, v3, sig3, params["wo"], params["bo"],
        n_heads=H, scale=scale, assoc_dtype=assoc_dtype)

    return (out_final, q3, series, prior, sigma_out)


# ------------------------------ parameter init --------------------------------
def init_params(key, d_model, n_heads):
    d_keys = d_model // n_heads
    d_values = d_model // n_heads
    ks = jax.random.split(key, 5)

    def lin(k, fan_in, fan_out):
        kw, kb = jax.random.split(k)
        bound = 1.0 / math.sqrt(fan_in)
        w = jax.random.uniform(kw, (fan_in, fan_out), jnp.float32, -bound, bound)
        b = jax.random.uniform(kb, (fan_out,), jnp.float32, -bound, bound)
        return w, b

    wq, bq = lin(ks[0], d_model, d_keys * n_heads)
    wk, bk = lin(ks[1], d_model, d_keys * n_heads)
    wv, bv = lin(ks[2], d_model, d_values * n_heads)
    ws, bs = lin(ks[3], d_model, n_heads)
    wo, bo = lin(ks[4], d_values * n_heads, d_model)
    return dict(wq=wq, bq=bq, wk=wk, bk=bk, wv=wv, bv=bv,
                ws=ws, bs=bs, wo=wo, bo=bo)


# --------------------------- pure-JAX reference -------------------------------
def reference_forward(params, queries, keys, values, n_heads):
    B, L, d_model = queries.shape
    S = keys.shape[1]
    H = n_heads

    def lin(x, w, b):
        return x @ w + b

    q = lin(queries, params["wq"], params["bq"]).reshape(B, L, H, -1)
    k = lin(keys, params["wk"], params["bk"]).reshape(B, S, H, -1)
    v = lin(values, params["wv"], params["bv"]).reshape(B, S, H, -1)
    sig = lin(queries, params["ws"], params["bs"]).reshape(B, L, H)

    E = q.shape[-1]
    scale = 1.0 / math.sqrt(E)
    scores = jnp.einsum("blhe,bshe->bhls", q, k)
    attn = scale * scores
    series = jax.nn.softmax(attn, axis=-1)

    sig_t = jnp.transpose(sig, (0, 2, 1))                    # (B, H, L)
    s = jax.nn.sigmoid(sig_t * 5.0) + 1e-5
    s = jnp.power(3.0, s) - 1.0
    s_b = jnp.broadcast_to(s[..., None], (B, H, L, S))

    ii = jnp.arange(L, dtype=jnp.float32)
    jj = jnp.arange(S, dtype=jnp.float32)
    dist = jnp.abs(ii[:, None] - jj[None, :])
    prior = (1.0 / (math.sqrt(2.0 * math.pi) * s_b)) * jnp.exp(
        -(dist * dist) / (2.0 * s_b * s_b))

    out = jnp.einsum("bhls,bshd->blhd", series, v).reshape(B, L, -1)
    out_final = lin(out, params["wo"], params["bo"])
    return (out_final, q.reshape(B, L, -1), series, prior, s_b)


if __name__ == "__main__":
    B, L, d_model, H = 2, 8, 32, 4

    key = jax.random.PRNGKey(0)
    kq, kk, kv, kp = jax.random.split(key, 4)
    queries = jax.random.normal(kq, (B, L, d_model), jnp.float32)
    keys_in = jax.random.normal(kk, (B, L, d_model), jnp.float32)
    values_in = jax.random.normal(kv, (B, L, d_model), jnp.float32)
    params = init_params(kp, d_model, H)

    names = ("out", "queries", "series", "prior", "sigma")
    # bf16 matmul operands + bf16 series/prior/sigma outputs; prior/sigma are
    # 1/sigma-amplified, so they get a looser relative tolerance.
    tol = {"out": (2e-2, 5e-2), "queries": (2e-2, 5e-2), "series": (2e-2, 5e-2),
           "prior": (2e-2, 1e-1), "sigma": (2e-2, 1e-1)}

    def check(outs, refs, tag):
        for name, o, r in zip(names, outs, refs):
            assert o.shape == r.shape, (tag, name, o.shape, r.shape)
            atol, rtol = tol[name]
            assert jnp.allclose(o.astype(jnp.float32), r, atol=atol, rtol=rtol), \
                f"mismatch in {name} ({tag})"

    # general path: distinct q/k/v inputs
    outs = attention_layer_forward(params, queries, keys_in, values_in,
                                   attn_mask=None, n_heads=H)
    outs = jax.block_until_ready(outs)
    check(outs, reference_forward(params, queries, keys_in, values_in, H),
          "cross")

    # encoder self-attention fast path: queries is keys is values
    outs_sa = attention_layer_forward(params, queries, queries, queries,
                                      attn_mask=None, n_heads=H)
    outs_sa = jax.block_until_ready(outs_sa)
    check(outs_sa, reference_forward(params, queries, queries, queries, H),
          "self")

    print("KERNEL_OK")
</pallas_src>

<mosaic_0001>
module attributes {stable_mosaic.version = 11 : i64} {
  func.func @_fused_proj_kernel(%arg0: i32, %arg1: memref<8x32xf32, #tpu.memory_space<vmem>>, %arg2: memref<32x36xbf16, #tpu.memory_space<vmem>>, %arg3: memref<1x36xf32, #tpu.memory_space<vmem>>, %arg4: memref<8x32xf32, #tpu.memory_space<vmem>>, %arg5: memref<8x4xf32, #tpu.memory_space<vmem>>) attributes {dimension_semantics = [#tpu.dimension_semantics<parallel>], iteration_bounds = array<i64: 2>, scalar_prefetch = 0 : i64, scratch_operands = 0 : i64, tpu.core_type = #tpu.core_type<tc>, window_params = [{transform_indices = @transform_0, window_bounds = array<i64: 8, 32>}, {pipeline_mode = #tpu.pipeline_mode<synchronous>, transform_indices = @transform_1, window_bounds = array<i64: 32, 36>}, {pipeline_mode = #tpu.pipeline_mode<synchronous>, transform_indices = @transform_2, window_bounds = array<i64: 1, 36>}, {transform_indices = @transform_3, window_bounds = array<i64: 8, 32>}, {transform_indices = @transform_4, window_bounds = array<i64: 8, 4>}]} {
    %c0 = arith.constant 0 : index
    %c0_0 = arith.constant 0 : index
    %0 = vector.load %arg1[%c0, %c0_0] : memref<8x32xf32, #tpu.memory_space<vmem>>, vector<8x32xf32>
    %1 = arith.truncf %0 : vector<8x32xf32> to vector<8x32xbf16>
    %c0_1 = arith.constant 0 : index
    %c0_2 = arith.constant 0 : index
    %2 = vector.load %arg2[%c0_1, %c0_2] : memref<32x36xbf16, #tpu.memory_space<vmem>>, vector<32x36xbf16>
    %cst = arith.constant dense<0.000000e+00> : vector<8x36xf32>
    %3 = tpu.matmul %1, %2, %cst {dimension_numbers = #tpu.dot_dimension_numbers<[1], [0], [0], [1], [0, 0, 1, 1], [], []>} : vector<8x32xbf16>, vector<32x36xbf16>, vector<8x36xf32> -> vector<8x36xf32>
    %c0_3 = arith.constant 0 : index
    %c0_4 = arith.constant 0 : index
    %4 = vector.load %arg3[%c0_3, %c0_4] : memref<1x36xf32, #tpu.memory_space<vmem>>, vector<1x36xf32>
    %5 = vector.broadcast %4 : vector<1x36xf32> to vector<8x36xf32>
    %6 = arith.addf %3, %5 : vector<8x36xf32>
    %7 = vector.extract_strided_slice %6 {offsets = [0, 0], sizes = [8, 32], strides = [1, 1]} : vector<8x36xf32> to vector<8x32xf32>
    %c0_5 = arith.constant 0 : index
    %c0_6 = arith.constant 0 : index
    %8 = vector.load %arg4[%c0_5, %c0_6] : memref<8x32xf32, #tpu.memory_space<vmem>>, vector<8x32xf32>
    tpu.vector_store %arg4[%c0_5, %c0_6], %7 {strides = array<i32>} : memref<8x32xf32, #tpu.memory_space<vmem>>, vector<8x32xf32>,
    %9 = vector.extract_strided_slice %6 {offsets = [0, 32], sizes = [8, 4], strides = [1, 1]} : vector<8x36xf32> to vector<8x4xf32>
    %cst_7 = arith.constant 5.000000e+00 : f32
    %10 = vector.broadcast %cst_7 : f32 to vector<8x4xf32>
    %11 = arith.mulf %9, %10 : vector<8x4xf32>
    %12 = arith.negf %11 : vector<8x4xf32>
    %13 = math.exp %12 : vector<8x4xf32>
    %cst_8 = arith.constant 1.000000e+00 : f32
    %14 = vector.broadcast %cst_8 : f32 to vector<8x4xf32>
    %15 = arith.addf %14, %13 : vector<8x4xf32>
    %16 = arith.divf %14, %15 : vector<8x4xf32>
    %cst_9 = arith.constant 9.99999974E-6 : f32
    %17 = vector.broadcast %cst_9 : f32 to vector<8x4xf32>
    %18 = arith.addf %16, %17 : vector<8x4xf32>
    %cst_10 = arith.constant 1.09861231 : f32
    %19 = vector.broadcast %cst_10 : f32 to vector<8x4xf32>
    %20 = arith.mulf %18, %19 : vector<8x4xf32>
    %21 = math.exp %20 : vector<8x4xf32>
    %cst_11 = arith.constant 1.000000e+00 : f32
    %22 = vector.broadcast %cst_11 : f32 to vector<8x4xf32>
    %23 = arith.subf %21, %22 : vector<8x4xf32>
    %c0_12 = arith.constant 0 : index
    %c0_13 = arith.constant 0 : index
    %24 = vector.load %arg5[%c0_12, %c0_13] : memref<8x4xf32, #tpu.memory_space<vmem>>, vector<8x4xf32>
    tpu.vector_store %arg5[%c0_12, %c0_13], %23 {strides = array<i32>} : memref<8x4xf32, #tpu.memory_space<vmem>>, vector<8x4xf32>,
    return
  }
  func.func @transform_0(%arg0: i32) -> (i32, i32) {
    %c0_i32 = arith.constant 0 : i32
    %c0_i32_0 = arith.constant 0 : i32
    return %arg0, %c0_i32 : i32, i32
  }
  func.func @transform_1(%arg0: i32) -> (i32, i32) {
    %c0_i32 = arith.constant 0 : i32
    %c0_i32_0 = arith.constant 0 : i32
    %c0_i32_1 = arith.constant 0 : i32
    return %c0_i32, %c0_i32_0 : i32, i32
  }
  func.func @transform_2(%arg0: i32) -> (i32, i32) {
    %c0_i32 = arith.constant 0 : i32
    %c0_i32_0 = arith.constant 0 : i32
    %c0_i32_1 = arith.constant 0 : i32
    return %c0_i32, %c0_i32_0 : i32, i32
  }
  func.func @transform_3(%arg0: i32) -> (i32, i32) {
    %c0_i32 = arith.constant 0 : i32
    %c0_i32_0 = arith.constant 0 : i32
    return %arg0, %c0_i32 : i32, i32
  }
  func.func @transform_4(%arg0: i32) -> (i32, i32) {
    %c0_i32 = arith.constant 0 : i32
    %c0_i32_0 = arith.constant 0 : i32
    return %arg0, %c0_i32 : i32, i32
  }
}

</mosaic_0001>

<bundles_post_ra>
// kernel: tpu_custom_call.1
= control target key start
LH: loop header
LB: loop body
LE: loop exit
PB: predicated region body
PF: predicated region fallthrough
CT: control target
= control target key end

     0   :  { %10 = vsyncpa [#allocation3], 0  ;;  %s874_s0 = inlined_call_operand.hbm [shape: f32[16,32], index: 0, kind: input, shape index: {}]   ;;  %s875_s1 = inlined_call_operand.hbm [shape: bf16[32,36], index: 1, kind: input, shape index: {}]   ;;  %s876_s2 = inlined_call_operand.vmem [shape: f32[1,36], index: 2, kind: input, shape index: {}]   ;;  %s877_s3 = inlined_call_operand.hbm [shape: f32[16,32], index: 3, kind: output, shape index: {0}]   ;;  %s878_s4 = inlined_call_operand.vmem [shape: f32[16,4], index: 4, kind: output, shape index: {1}]  }
   0x1   :  { %12 = vsyncpa [#allocation3 + $0x1], 0 }
   0x2   :  { %13 = vsyncpa [#allocation6], 0 }
   0x3   :  { %14 = vsyncpa [#allocation4], 0 }
   0x4   :  { %16 = vsyncpa [#allocation4 + $0x1], 0  ;;  %s712_s15 = smov 0   ;;  %s714_s16 = smov 0  }
   0x5   :  { %s716_s17 = smov 0   ;;  %s718_s18 = smov 0  }
   0x6 LB: > { %s733_s19 = sadd.s32 4294967295, %s677_s18   ;;  %s453_s20 = sadd.s32 4294967294, %s677_s18   ;;  %s677_s18 = sphi %s718_s18, %s900_s18   ;;  %s673_s17 = sphi %s716_s17, %s899_s17   ;;  %s669_s16 = sphi %s714_s16, %s898_s16   ;;  %s665_s15 = sphi %s712_s15, %s897_s15  }
   0x7   : > { %p42_p0 = scmp.ne.s32.totalorder %s669_s16, %s665_s15  ;;  %p879_p1 = scmp.eq.s32.totalorder %s733_s19, 0 }
   0x8   : > { %p114_p3 = scmp.eq.s32.totalorder %s453_s20, 1  ;;  %p454_p5 = scmp.ge.s32.totalorder %s677_s18, 1 }
   0x9   : > { %p742_p4 = por %p879_p1, %p42_p0  ;;  %p147_p7 = scmp.lt.s32.totalorder %s677_s18, 3 }
   0xa   : > { %p747_p6 = por %p114_p3, %p42_p0  ;;  %s679_s24 = smov [#allocation5]  }
   0xb   : > { %s883_s21 = scalar_select %p742_p4, 1, 0 }
   0xc   : > { %s884_s22 = scalar_select %p747_p6, 1, 0 }
   0xd   : > { %p752_p8 = pnand %p454_p5, %p147_p7  ;;  %s159_s25 = sshll.u32 %s679_s24, 4  ;;  %s160_s25 = int_to_ptr.vmem [resolvable:$true] %s159_s25 }
   0xe   : > { %s766_s27 = sadd.s32 1, %s677_s18   ;;  %s29_s28 = sadd.s32 1, %s673_s17 }
   0xf   : > { %s885_s23 = scalar_select %p752_p8, 1, 0 }
  0x10   : > { %p493_p9 = pneg %p752_p8  ;;  %s26_s29 = ssub.s32 %s677_s18, %s766_s27 }
  0x11   : > { %s566_s30 = scalar_lea.vmem %s160_s25, 256  ;;  %p574_p5 = scmp.lt.s32.totalorder %s160_s25, %s160_s25 }
  0x12   : > { %p761_p11 = pnand %p493_p9, %p879_p1  ;;  %p567_p13 = scmp.ne.s32.totalorder %s160_s25, %s566_s30 }
  0x13   : > { %p575_p7 = scmp.lt.s32.totalorder %s566_s30, %s566_s30 }
  0x14   : > { %p557_p12 = pneg %p761_p11 }
  0x15   : > { %p576_p10 = por %p575_p7, %p574_p5 }
  0x16   : > { %p569_p0 = pnand %p567_p13, %p557_p12 }
  0x18   : > { %p570_p3 = pneg %p569_p0 }
  0x1a   : > { %p577_p2 = pnand %p576_p10, %p570_p3 }
  0x1c   : > { %580 = shalt.err (!%p577_p2)
}
  0x1d   : > { %s680_s5 = smov 64   ;;  %s681_s6 = smov 4  }
  0x1e   : > { %496 = dma.hbm_to_vmem [thread:$0]  (!%p761_p11), %s875_s1, 256, %s160_s25, [#allocation6], %s680_s5, %s680_s5, %s681_s6  }
  0x1f   : > { %p27_p9 = scmp.eq.s32.totalorder %s26_s29, 0  ;;  %p36_p12 = scmp.ne.s32.totalorder %s673_s17, %s669_s16 }
  0x20   : > { %p37_p10 = scmp.eq.s32.totalorder %s677_s18, 0  ;;  %p506_p2 = scmp.lt.s32.totalorder %s677_s18, 2 }
  0x21   : > { %s783_s9 = scalar_select %p27_p9, %s673_s17, %s29_s28  }
  0x22   : > { %p38_p13 = por %p37_p10, %p36_p12  ;;  %p887_p0 = scmp.eq.s32.totalorder %s733_s19, 1 }
  0x23   : > { %s176_s11 = sand.u32 1, %s673_s17   ;;  %s458_s12 = sshll.u32 %s677_s18, 7 }
  0x24   : > { %p787_p3 = por %p887_p0, %p36_p12  ;;  %s457_s13 = sshll.u32 %s176_s11, 3 }
  0x25   : > { %s796_s24 = scalar_lea.hbm %s874_s0, %s458_s12  ;;  %s180_s25 = scalar_lea.vmem [#allocation2], %s457_s13 }
  0x26   : > { %s888_s10 = scalar_select %p787_p3, 1, 0 }
  0x27   : > { %s187_s26 = sshll.u32 %s180_s25, 4  ;;  %p798_p11 = pnand %p506_p2, %p38_p13  ;;  %s188_s26 = int_to_ptr.vmem [resolvable:$true] %s187_s26 }
  0x28   : > { %s177_s29 = scalar_lea.sflag [#allocation3], %s176_s11  ;;  %s581_s30 = scalar_lea.hbm %s796_s24, 128 }
  0x29   : > { %p582_p5 = scmp.ne.s32.totalorder %s796_s24, %s581_s30  ;;  %p583_p7 = pneg %p798_p11 }
  0x2a   : > { %s586_s7 = scalar_lea.hbm %s874_s0, 256  ;;  %p587_p10 = scmp.lt.s32.totalorder %s796_s24, %s874_s0 }
  0x2b   : > { %p584_p9 = pnand %p583_p7, %p582_p5  ;;  %p588_p2 = scmp.lt.s32.totalorder %s586_s7, %s581_s30 }
  0x2d   : > { %p585_p12 = pneg %p584_p9  ;;  %p589_p13 = por %p588_p2, %p587_p10 }
  0x2f   : > { %p590_p0 = pnand %p589_p13, %p585_p12 }
  0x31   : > { %593 = shalt.err (!%p590_p0)
}
  0x32   : > { %s594_s13 = scalar_lea.vmem %s188_s26, 128  ;;  %s682_s11 = smov [#allocation2]  }
  0x33   : > { %p595_p1 = scmp.ne.s32.totalorder %s188_s26, %s594_s13  ;;  %s599_s14 = sshll.u32 %s682_s11, 4  ;;  %s600_s14 = int_to_ptr.vmem [resolvable:$false] %s599_s14 }
  0x34   : > { %s601_s20 = scalar_lea.vmem %s600_s14, 256  ;;  %p602_p5 = scmp.lt.s32.totalorder %s188_s26, %s600_s14 }
  0x35   : > { %p597_p6 = pnand %p595_p1, %p583_p7  ;;  %p603_p9 = scmp.lt.s32.totalorder %s601_s20, %s594_s13 }
  0x37   : > { %p598_p3 = pneg %p597_p6  ;;  %p604_p4 = por %p603_p9, %p602_p5 }
  0x39   : > { %p605_p8 = pnand %p604_p4, %p598_p3 }
  0x3b   : > { %608 = shalt.err (!%p605_p8)
}
  0x3c   : > { %500 = dma.hbm_to_vmem [thread:$0]  (!%p798_p11), %s796_s24, 128, %s188_s26, %s177_s29  }
  0x3d   : > { %p890_p12 = scmp.ne.s32.totalorder %s885_s23, 0 }
  0x3e   : > { %s819_s25 = sand.u32 (!%p890_p12), 1, %s669_s16   ;;  %p891_p1 = scmp.ne.s32.totalorder (!%p890_p12), %s883_s21, 0 }
  0x3f   : > { %196 = sbr.rel (%p890_p12) target bundleno = 448 (0x1c0), region = 32  ;;  %s460_s30 = sshll.u32 (!%p890_p12), %s819_s25, 3 }
  0x40   : > { %s199_s5 = scalar_lea.sflag (!%p890_p12), [#allocation3], %s819_s25  ;;  %s202_s6 = scalar_lea.vmem (!%p890_p12), [#allocation2], %s460_s30 }
  0x44   : > { %652 = dma.done.wait (%p891_p1), %s199_s5, 128  }
  0x45   : > { %654 = vsyncadd (%p891_p1), %s199_s5, 4294967168  ;;  %p892_p4 = scmp.eq.s32.totalorder %s733_s19, 0 }
  0x47   : > { %656 = dma.done.wait (%p892_p4), [#allocation6], 256   ;;  %p893_p6 = pmov %p892_p4 }
  0x48   : > { %v683_v0 = vmov 0.0   ;;  %vm684_vm0 = vmmov 0   ;;  %v547_v1 = vld [vmem:[#allocation5 + $0x8] sm:$0xff]   ;;  %v548_v2 = vld [vmem:[#allocation5] sm:$0xff]   ;;  %v240_v3 = vld [vmem:[%s202_s6] sm:$0xff]  ;;  %vm265_vm1 = vcmask 261120  }
  0x49   : > { %658 = vsyncadd (%p893_p6), [#allocation6], 4294967040  ;;  %477 = vmatprep.subr.bf16.mxu0 %v683_v0  ;;  %481 = vmatprep.mubr.msk.bf16.mxu0 %vm684_vm0, %v683_v0  ;;  %v241_v4 = vpack.c.bf16 %v240_v3, %v240_v3  ;;  %v464_v5 = vld [vmem:[%s876_s2] ss:$0 sm:$0xff]  ;;  %s228_s24 = scalar_lea.vmem [#allocation7], %s460_s30  ;;  %s471_s26 = sshll.u32 %s733_s19, 7 }
  0x4a   : > { %478 = vmatpush3.bf16.msra.mxu0 %v547_v1  ;;  %s346_s28 = sshll.u32 %s228_s24, 4  ;;  %s344_s8 = scalar_lea.hbm %s877_s3, %s471_s26  ;;  %s347_s28 = int_to_ptr.vmem [resolvable:$true] %s346_s28 }
  0x4b   : > { %479 = vmatprep.subr.bf16.mxu0 %v683_v0  ;;  %s329_s12 = scalar_lea.sflag [#allocation4], %s819_s25  ;;  %s609_s13 = scalar_lea.vmem %s347_s28, 128 }
  0x4c   : > { %p610_p8 = scmp.ne.s32.totalorder %s347_s28, %s609_s13  ;;  %p894_p3 = scmp.ne.s32.totalorder %s888_s10, 0 }
  0x4d   : > { %s685_s11 = smov [#allocation7]  }
  0x4e   : > { %480 = vmatpush3.bf16.msra.mxu0 %v548_v2  ;;  %p611_p11 = pnand %p610_p8, %p894_p3  ;;  %s613_s14 = sshll.u32 %s685_s11, 4  ;;  %s614_s14 = int_to_ptr.vmem [resolvable:$false] %s613_s14 }
  0x4f   : > { %s615_s20 = scalar_lea.vmem %s614_s14, 256  ;;  %p616_p10 = scmp.lt.s32.totalorder %s347_s28, %s614_s14 }
  0x50   : > { %p612_p7 = pneg %p611_p11  ;;  %p617_p2 = scmp.lt.s32.totalorder %s615_s20, %s609_s13 }
  0x51   : > { %482 = vmatmul.mubr.msk.bf16.vlgmr.msra.gmra.mxu0 %vm265_vm1, %v241_v4 }
  0x52   : > { %p618_p13 = por %p617_p2, %p616_p10 }
  0x54   : > { %p619_p0 = pnand %p618_p13, %p612_p7 }
 0x111   : > { %v303_v6 = vpop.f32.mrf.mxu0 }
 0x112   : > { %v304_v7 = vadd.f32 %v464_v5, %v303_v6 }
 0x113   : > { %v483_v8 = vpop.f32.mrf.mxu0 }
 0x114   : > { %v468_v9 = vmul.f32 -5.0, %v304_v7  ;;  %309 = vst.msk [vmem:[%s228_s24] sm:$0xff] %vm265_vm1, %v304_v7 }
 0x115   : > { %v306_v10 = vpop.f32.mrf.mxu0 }
 0x116   : > { %v312_v11 = vmul.f32 1.442695, %v468_v9 }
 0x117   : > { %v484_v12 = vpop.f32.mrf.mxu0 }
 0x118   : > { %549 = vpow2.f32 %v312_v11 }
 0x125   : > { %v550_v13 = vpop.eup %549 }
 0x126   : > { %v314_v14 = vadd.f32 1.0, %v550_v13 }
 0x128   : > { %551 = vrcp.f32 %v314_v14 }
 0x135   : > { %v552_v15 = vpop.eup %551 }
 0x136   : > { %v317_v16 = vadd.f32 1e-05, %v552_v15 }
 0x138   : > { %v318_v17 = vmul.f32 1.0986123, %v317_v16 }
 0x13a   : > { %v319_v18 = vmul.f32 1.442695, %v318_v17 }
 0x13c   : > { %553 = vpow2.f32 %v319_v18 }
 0x13d   : > { %622 = shalt.err (!%p619_p0)
}
 0x13e   : > { %s623_s30 = scalar_lea.hbm %s344_s8, 128  ;;  %s627_s6 = scalar_lea.hbm %s877_s3, 256 }
 0x13f   : > { %p624_p5 = scmp.ne.s32.totalorder %s344_s8, %s623_s30  ;;  %p628_p1 = scmp.lt.s32.totalorder %s344_s8, %s877_s3 }
 0x140   : > { %p629_p4 = scmp.lt.s32.totalorder %s627_s6, %s623_s30 }
 0x141   : > { %p625_p9 = pnand %p624_p5, %p894_p3 }
 0x142   : > { %p630_p6 = por %p629_p4, %p628_p1 }
 0x143   : > { %p626_p12 = pneg %p625_p9 }
 0x145   : > { %p631_p8 = pnand %p630_p6, %p626_p12 }
 0x147   : > { %634 = shalt.err (!%p631_p8)
}
 0x148   : > { %491 = dma.vmem_to_hbm [thread:$0]  (%p894_p3), %s347_s28, 128, %s344_s8, %s329_s12   ;;  %vm326_vm2 = vcmask 31744  }
 0x149   : > { %v554_v19 = vpop.eup %553  ;;  %s686_s24 = smov 96   ;;  %p235_p11 = scmp.lt.s32.totalorder %s733_s19, 1 }
 0x14a   : > { %v469_v20 = vadd.f32 -1.0, %v554_v19 }
 0x14b   : > { %s902_s19 = smov (!%p235_p11, %s733_s19), 1 }
 0x14c   : > { %323 = vrot.lane.b32.xlu0 %v469_v20, %s686_s24  ;;  %s463_s26 = sshll.u32 %s902_s19, 3 }
 0x14d   : > { %s238_s13 = scalar_lea.vmem %s878_s4, %s463_s26 }
 0x1be   : > { %v324_v21 = vpop.permute.xlu0 %323 }
 0x1bf   : > { %327 = vst.msk [vmem:[%s238_s13] sm:$0xff] %vm326_vm2, %v324_v21 }
 0x1c0 PF: > { %s361_s10 = sand.u32 1, %s665_s15   ;;  %p895_p3 = scmp.ne.s32.totalorder %s884_s22, 0 }
 0x1c1   : > { %p896_p7 = scmp.ge.s32.totalorder %s677_s18, 2  ;;  %s362_s28 = scalar_lea.sflag [#allocation4], %s361_s10 }
 0x1c3   : > { %p502_p10 = pnand %p896_p7, %p895_p3 }
 0x1c5   : > { %p503_p2 = pneg %p502_p10 }
 0x1c7   : > { %660 = dma.done.wait (%p503_p2), %s362_s28, 128  }
 0x1c8   : > { %662 = vsyncadd (%p503_p2), %s362_s28, 4294967168  ;;  %p19_p13 = scmp.ge.s32.totalorder %s766_s27, 4   ;;  %s897_s15 = smov %s669_s16 }
 0x1c9   : > { %s898_s16 = smov %s673_s17  ;;  %s899_s17 = smov %s783_s9 }
 0x1ca   : > { %s900_s18 = smov %s766_s27  ;;  %21 = sbr.rel (!%p19_p13) target bundleno = 6 (0x6), region = 93 }
 0x1cf   :  { %374 = vsyncpa [#allocation3], 1 }
 0x1d0   :  { %376 = vsyncpa [#allocation3 + $0x1], 1 }
 0x1d1   :  { %377 = vsyncpa [#allocation6], 1 }
 0x1d2   :  { %378 = vsyncpa [#allocation4], 1 }
 0x1d3   :  { %380 = vsyncpa [#allocation4 + $0x1], 1 }

</bundles_post_ra>
